<compile_context>
chip_gen: v7x
topology: tpu7x:2x2x1
jax: 0.10.0
libtpu: 0.0.40
codegen_flags: <defaults>
</compile_context>

<pallas_src>
import jax
import jax.numpy as jnp
from jax.experimental import pallas as pl
from jax.experimental.pallas import tpu as pltpu


def dqn_forward(x, kparams):
    """Pallas forward. x: (B, T, D) f32; kparams from prep_kernel_params."""
    B, T, D = x.shape
    H = kparams["wrec"].shape[0] // 2
    A = kparams["fc"].shape[1]
    BP = ((B + 7) // 8) * 8          # sublane-aligned rows per time step

    # Time-major, sublane-padded, ones column appended (bias folding). One extra
    # all-zero time slab feeds the final wavefront iteration (layer-1 only).
    x_tm = jnp.transpose(x, (1, 0, 2))                      # (T, B, D)
    x_pad = jnp.pad(x_tm, ((0, 1), (0, BP - B), (0, 0)))    # (T+1, BP, D)
    ones = jnp.ones((T + 1, BP, 1), x.dtype)
    x_aug = jnp.concatenate([x_pad, ones], axis=2).reshape((T + 1) * BP, D + 1)

    def kernel(x_ref, ww_ref, wr_ref, fc_ref, out_ref):
        # Hoisted, batched input projection.  Columns arrive in the interleaved
        # gate layout [i0 i1 f0 f1 g0 g1 o0 o1]; both layers' biases are already
        # added via the ones column; g columns pre-scaled by 2.
        zadd = jnp.dot(x_ref[...], ww_ref[...],
                       preferred_element_type=jnp.float32)   # ((T+1)*BP, 8H)

        wrec = wr_ref[...]                                    # (2H, 8H)
        hcat = jnp.zeros((BP, 2 * H), jnp.float32)            # [h0 | h1]
        ccat = jnp.zeros((BP, 2 * H), jnp.float32)            # [c0 | c1]
        l0_mask = (jax.lax.broadcasted_iota(jnp.int32, (BP, 2 * H), 1) < H
                   ).astype(jnp.float32)

        # Wavefront: iteration s = layer-0 step s + layer-1 step s-1.
        # Critical path per iteration: 1 MXU push, 1 VPU add, 2 EUP pushes.
        for s in range(T + 1):
            z = zadd[s * BP:(s + 1) * BP, :] + jnp.dot(
                hcat, wrec, preferred_element_type=jnp.float32)   # (BP, 8H)
            sg = jax.nn.sigmoid(z)                                 # one EUP push
            i = sg[:, 0:2 * H]
            f = sg[:, 2 * H:4 * H]
            g = 2.0 * sg[:, 4 * H:6 * H] - 1.0    # == tanh (g cols pre-scaled)
            o = sg[:, 6 * H:8 * H]
            ccat = f * ccat + i * g
            hcat = o * jnp.tanh(ccat)                              # one EUP push
            if s == 0:
                # Layer 1 has no time step yet; discard its spurious half so
                # layer-1 step 0 starts from h1 = c1 = 0.
                hcat = hcat * l0_mask
                ccat = ccat * l0_mask

        # FC head on the final layer-1 hidden state (== lstm_out[:, -1, :]).
        h_last = hcat[:, H:2 * H]
        q = jnp.dot(h_last, fc_ref[0:H, :], preferred_element_type=jnp.float32)
        out_ref[...] = (q[0:B, :] + fc_ref[H:H + 1, :]).astype(out_ref.dtype)

    vmem = pl.BlockSpec(memory_space=pltpu.MemorySpace.VMEM)
    return pl.pallas_call(
        kernel,
        out_shape=jax.ShapeDtypeStruct((B, A), jnp.float32),
        in_specs=[vmem, vmem, vmem, vmem],
        out_specs=vmem,
    )(x_aug, kparams["w_wide"], kparams["wrec"], kparams["fc"])


def init_raw_params(key, input_size, hidden_size, num_actions):
    """PyTorch-convention params: weight_ih (4H,Din), weight_hh (4H,H), biases (4H,),
    fc.weight (A,H), fc.bias (A,). Gate order [i, f, g, o]."""
    H, D, A = hidden_size, input_size, num_actions
    k = 1.0 / jnp.sqrt(jnp.float32(H))
    keys = jax.random.split(key, 10)

    def u(kk, shape):
        return jax.random.uniform(kk, shape, jnp.float32, -k, k)

    return {
        "w_ih_l0": u(keys[0], (4 * H, D)),
        "w_hh_l0": u(keys[1], (4 * H, H)),
        "b_ih_l0": u(keys[2], (4 * H,)),
        "b_hh_l0": u(keys[3], (4 * H,)),
        "w_ih_l1": u(keys[4], (4 * H, H)),
        "w_hh_l1": u(keys[5], (4 * H, H)),
        "b_ih_l1": u(keys[6], (4 * H,)),
        "b_hh_l1": u(keys[7], (4 * H,)),
        "fc_w": u(keys[8], (A, H)),
        "fc_b": u(keys[9], (A,)),
    }


def _interleave_gates(l0_blk, l1_blk, H):
    """l0_blk, l1_blk: (R, 4H), gate order [i,f,g,o] along columns.
    Returns (R, 8H) with column layout [i0 i1 f0 f1 g0 g1 o0 o1]; the g-gate
    columns of both layers are pre-scaled by 2 (tanh-via-sigmoid trick)."""
    cols = []
    for k in range(4):
        scale = 2.0 if k == 2 else 1.0
        cols.append(scale * l0_blk[:, k * H:(k + 1) * H])
        cols.append(scale * l1_blk[:, k * H:(k + 1) * H])
    return jnp.concatenate(cols, axis=1)


def prep_kernel_params(raw):
    """Pack the weights for the wavefront kernel:
      w_wide: (D+1, 8H)  -- w_ih0 in layer-0 gate slots, zeros in layer-1 slots,
                            last row = [b0 | b1] (fused ih+hh biases), for the
                            single hoisted input projection (x with ones column).
      wrec:   (2H, 8H)   -- rows 0:H  = [w_hh0 | w_ih1], rows H:2H = [0 | w_hh1],
                            so [h0|h1] @ wrec yields both layers' recurrent
                            pre-activations in one MXU push.
      fc:     (H+1, A)   -- [fc_w.T ; fc_b]."""
    H = raw["w_hh_l0"].shape[1]
    D = raw["w_ih_l0"].shape[1]

    b0 = (raw["b_ih_l0"] + raw["b_hh_l0"]).reshape(1, 4 * H)
    b1 = (raw["b_ih_l1"] + raw["b_hh_l1"]).reshape(1, 4 * H)

    l0_in = jnp.concatenate([raw["w_ih_l0"].T, b0], axis=0)          # (D+1, 4H)
    l1_in = jnp.concatenate([jnp.zeros((D, 4 * H), jnp.float32), b1], axis=0)
    w_wide = _interleave_gates(l0_in, l1_in, H)                       # (D+1, 8H)

    top = _interleave_gates(raw["w_hh_l0"].T, raw["w_ih_l1"].T, H)    # (H, 8H)
    bot = _interleave_gates(jnp.zeros((H, 4 * H), jnp.float32),
                            raw["w_hh_l1"].T, H)                      # (H, 8H)
    wrec = jnp.concatenate([top, bot], axis=0)                        # (2H, 8H)

    fc = jnp.concatenate([raw["fc_w"].T, raw["fc_b"].reshape(1, -1)], axis=0)
    return {"w_wide": w_wide, "wrec": wrec, "fc": fc}


def dqn_reference(x, raw):
    """Pure-JAX reference using the original (unscaled, PyTorch-shaped) params."""
    B, T, D = x.shape
    H = raw["w_hh_l0"].shape[1]

    def lstm_layer(xs, w_ih, w_hh, b_ih, b_hh):
        h = jnp.zeros((B, H), jnp.float32)
        c = jnp.zeros((B, H), jnp.float32)
        outs = []
        for t in range(T):
            z = xs[:, t, :] @ w_ih.T + h @ w_hh.T + b_ih + b_hh
            i = jax.nn.sigmoid(z[:, 0 * H:1 * H])
            f = jax.nn.sigmoid(z[:, 1 * H:2 * H])
            g = jnp.tanh(z[:, 2 * H:3 * H])
            o = jax.nn.sigmoid(z[:, 3 * H:4 * H])
            c = f * c + i * g
            h = o * jnp.tanh(c)
            outs.append(h)
        return jnp.stack(outs, axis=1)                  # (B, T, H)

    h1 = lstm_layer(x, raw["w_ih_l0"], raw["w_hh_l0"], raw["b_ih_l0"], raw["b_hh_l0"])
    h2 = lstm_layer(h1, raw["w_ih_l1"], raw["w_hh_l1"], raw["b_ih_l1"], raw["b_hh_l1"])
    return h2[:, -1, :] @ raw["fc_w"].T + raw["fc_b"]


if __name__ == "__main__":
    # DQN(input_size=16, hidden_size=32, lstm_layers=2, num_actions=4)
    B, T, D, H, A = 2, 8, 16, 32, 4

    key = jax.random.PRNGKey(0)
    kx, kp = jax.random.split(key)
    x = jax.random.normal(kx, (B, T, D), jnp.float32)
    raw = init_raw_params(kp, D, H, A)
    kparams = prep_kernel_params(raw)

    out = jax.block_until_ready(dqn_forward(x, kparams))
    ref = dqn_reference(x, raw)

    assert out.shape == (B, A)
    assert jnp.allclose(out, ref, rtol=1e-4, atol=1e-4), "mismatch vs JAX reference"

    print("KERNEL_OK")
</pallas_src>

<mosaic_0001>
module attributes {stable_mosaic.version = 11 : i64} {
  func.func @kernel(%arg0: memref<72x17xf32, #tpu.memory_space<vmem>>, %arg1: memref<17x256xf32, #tpu.memory_space<vmem>>, %arg2: memref<64x256xf32, #tpu.memory_space<vmem>>, %arg3: memref<33x4xf32, #tpu.memory_space<vmem>>, %arg4: memref<2x4xf32, #tpu.memory_space<vmem>>) attributes {dimension_semantics = [], scalar_prefetch = 0 : i64, scratch_operands = 0 : i64, tpu.core_type = #tpu.core_type<tc>} {
    %c0 = arith.constant 0 : index
    %c0_0 = arith.constant 0 : index
    %0 = vector.load %arg0[%c0, %c0_0] : memref<72x17xf32, #tpu.memory_space<vmem>>, vector<72x17xf32>
    %c0_1 = arith.constant 0 : index
    %c0_2 = arith.constant 0 : index
    %1 = vector.load %arg1[%c0_1, %c0_2] : memref<17x256xf32, #tpu.memory_space<vmem>>, vector<17x256xf32>
    %cst = arith.constant dense<0.000000e+00> : vector<72x256xf32>
    %2 = tpu.matmul %0, %1, %cst {dimension_numbers = #tpu.dot_dimension_numbers<[1], [0], [0], [1], [0, 0, 1, 1], [], []>} : vector<72x17xf32>, vector<17x256xf32>, vector<72x256xf32> -> vector<72x256xf32>
    %c0_3 = arith.constant 0 : index
    %c0_4 = arith.constant 0 : index
    %3 = vector.load %arg2[%c0_3, %c0_4] : memref<64x256xf32, #tpu.memory_space<vmem>>, vector<64x256xf32>
    %cst_5 = arith.constant 0.000000e+00 : f32
    %4 = vector.broadcast %cst_5 : f32 to vector<8x64xf32>
    %cst_6 = arith.constant 0.000000e+00 : f32
    %5 = vector.broadcast %cst_6 : f32 to vector<8x64xf32>
    %6 = tpu.iota {dimensions = array<i32: 1>} : vector<8x64xi32>
    %c32_i32 = arith.constant 32 : i32
    %7 = vector.broadcast %c32_i32 : i32 to vector<8x64xi32>
    %8 = arith.cmpi slt, %6, %7 : vector<8x64xi32>
    %9 = arith.extui %8 : vector<8x64xi1> to vector<8x64xi32>
    %10 = arith.sitofp %9 : vector<8x64xi32> to vector<8x64xf32>
    %11 = vector.extract_strided_slice %2 {offsets = [0, 0], sizes = [8, 256], strides = [1, 1]} : vector<72x256xf32> to vector<8x256xf32>
    %cst_7 = arith.constant dense<0.000000e+00> : vector<8x256xf32>
    %12 = tpu.matmul %4, %3, %cst_7 {dimension_numbers = #tpu.dot_dimension_numbers<[1], [0], [0], [1], [0, 0, 1, 1], [], []>} : vector<8x64xf32>, vector<64x256xf32>, vector<8x256xf32> -> vector<8x256xf32>
    %13 = arith.addf %11, %12 : vector<8x256xf32>
    %14 = arith.negf %13 : vector<8x256xf32>
    %15 = math.exp %14 : vector<8x256xf32>
    %cst_8 = arith.constant 1.000000e+00 : f32
    %16 = vector.broadcast %cst_8 : f32 to vector<8x256xf32>
    %17 = arith.addf %16, %15 : vector<8x256xf32>
    %18 = arith.divf %16, %17 : vector<8x256xf32>
    %19 = vector.extract_strided_slice %18 {offsets = [0, 0], sizes = [8, 64], strides = [1, 1]} : vector<8x256xf32> to vector<8x64xf32>
    %20 = vector.extract_strided_slice %18 {offsets = [0, 64], sizes = [8, 64], strides = [1, 1]} : vector<8x256xf32> to vector<8x64xf32>
    %21 = vector.extract_strided_slice %18 {offsets = [0, 128], sizes = [8, 64], strides = [1, 1]} : vector<8x256xf32> to vector<8x64xf32>
    %cst_9 = arith.constant 2.000000e+00 : f32
    %22 = vector.broadcast %cst_9 : f32 to vector<8x64xf32>
    %23 = arith.mulf %22, %21 : vector<8x64xf32>
    %cst_10 = arith.constant 1.000000e+00 : f32
    %24 = vector.broadcast %cst_10 : f32 to vector<8x64xf32>
    %25 = arith.subf %23, %24 : vector<8x64xf32>
    %26 = vector.extract_strided_slice %18 {offsets = [0, 192], sizes = [8, 64], strides = [1, 1]} : vector<8x256xf32> to vector<8x64xf32>
    %27 = arith.mulf %20, %5 : vector<8x64xf32>
    %28 = arith.mulf %19, %25 : vector<8x64xf32>
    %29 = arith.addf %27, %28 : vector<8x64xf32>
    %30 = math.tanh %29 : vector<8x64xf32>
    %31 = arith.mulf %26, %30 : vector<8x64xf32>
    %32 = arith.mulf %31, %10 : vector<8x64xf32>
    %33 = arith.mulf %29, %10 : vector<8x64xf32>
    %34 = vector.extract_strided_slice %2 {offsets = [8, 0], sizes = [8, 256], strides = [1, 1]} : vector<72x256xf32> to vector<8x256xf32>
    %cst_11 = arith.constant dense<0.000000e+00> : vector<8x256xf32>
    %35 = tpu.matmul %32, %3, %cst_11 {dimension_numbers = #tpu.dot_dimension_numbers<[1], [0], [0], [1], [0, 0, 1, 1], [], []>} : vector<8x64xf32>, vector<64x256xf32>, vector<8x256xf32> -> vector<8x256xf32>
    %36 = arith.addf %34, %35 : vector<8x256xf32>
    %37 = arith.negf %36 : vector<8x256xf32>
    %38 = math.exp %37 : vector<8x256xf32>
    %cst_12 = arith.constant 1.000000e+00 : f32
    %39 = vector.broadcast %cst_12 : f32 to vector<8x256xf32>
    %40 = arith.addf %39, %38 : vector<8x256xf32>
    %41 = arith.divf %39, %40 : vector<8x256xf32>
    %42 = vector.extract_strided_slice %41 {offsets = [0, 0], sizes = [8, 64], strides = [1, 1]} : vector<8x256xf32> to vector<8x64xf32>
    %43 = vector.extract_strided_slice %41 {offsets = [0, 64], sizes = [8, 64], strides = [1, 1]} : vector<8x256xf32> to vector<8x64xf32>
    %44 = vector.extract_strided_slice %41 {offsets = [0, 128], sizes = [8, 64], strides = [1, 1]} : vector<8x256xf32> to vector<8x64xf32>
    %cst_13 = arith.constant 2.000000e+00 : f32
    %45 = vector.broadcast %cst_13 : f32 to vector<8x64xf32>
    %46 = arith.mulf %45, %44 : vector<8x64xf32>
    %cst_14 = arith.constant 1.000000e+00 : f32
    %47 = vector.broadcast %cst_14 : f32 to vector<8x64xf32>
    %48 = arith.subf %46, %47 : vector<8x64xf32>
    %49 = vector.extract_strided_slice %41 {offsets = [0, 192], sizes = [8, 64], strides = [1, 1]} : vector<8x256xf32> to vector<8x64xf32>
    %50 = arith.mulf %43, %33 : vector<8x64xf32>
    %51 = arith.mulf %42, %48 : vector<8x64xf32>
    %52 = arith.addf %50, %51 : vector<8x64xf32>
    %53 = math.tanh %52 : vector<8x64xf32>
    %54 = arith.mulf %49, %53 : vector<8x64xf32>
    %55 = vector.extract_strided_slice %2 {offsets = [16, 0], sizes = [8, 256], strides = [1, 1]} : vector<72x256xf32> to vector<8x256xf32>
    %cst_15 = arith.constant dense<0.000000e+00> : vector<8x256xf32>
    %56 = tpu.matmul %54, %3, %cst_15 {dimension_numbers = #tpu.dot_dimension_numbers<[1], [0], [0], [1], [0, 0, 1, 1], [], []>} : vector<8x64xf32>, vector<64x256xf32>, vector<8x256xf32> -> vector<8x256xf32>
    %57 = arith.addf %55, %56 : vector<8x256xf32>
    %58 = arith.negf %57 : vector<8x256xf32>
    %59 = math.exp %58 : vector<8x256xf32>
    %cst_16 = arith.constant 1.000000e+00 : f32
    %60 = vector.broadcast %cst_16 : f32 to vector<8x256xf32>
    %61 = arith.addf %60, %59 : vector<8x256xf32>
    %62 = arith.divf %60, %61 : vector<8x256xf32>
    %63 = vector.extract_strided_slice %62 {offsets = [0, 0], sizes = [8, 64], strides = [1, 1]} : vector<8x256xf32> to vector<8x64xf32>
    %64 = vector.extract_strided_slice %62 {offsets = [0, 64], sizes = [8, 64], strides = [1, 1]} : vector<8x256xf32> to vector<8x64xf32>
    %65 = vector.extract_strided_slice %62 {offsets = [0, 128], sizes = [8, 64], strides = [1, 1]} : vector<8x256xf32> to vector<8x64xf32>
    %cst_17 = arith.constant 2.000000e+00 : f32
    %66 = vector.broadcast %cst_17 : f32 to vector<8x64xf32>
    %67 = arith.mulf %66, %65 : vector<8x64xf32>
    %cst_18 = arith.constant 1.000000e+00 : f32
    %68 = vector.broadcast %cst_18 : f32 to vector<8x64xf32>
    %69 = arith.subf %67, %68 : vector<8x64xf32>
    %70 = vector.extract_strided_slice %62 {offsets = [0, 192], sizes = [8, 64], strides = [1, 1]} : vector<8x256xf32> to vector<8x64xf32>
    %71 = arith.mulf %64, %52 : vector<8x64xf32>
    %72 = arith.mulf %63, %69 : vector<8x64xf32>
    %73 = arith.addf %71, %72 : vector<8x64xf32>
    %74 = math.tanh %73 : vector<8x64xf32>
    %75 = arith.mulf %70, %74 : vector<8x64xf32>
    %76 = vector.extract_strided_slice %2 {offsets = [24, 0], sizes = [8, 256], strides = [1, 1]} : vector<72x256xf32> to vector<8x256xf32>
    %cst_19 = arith.constant dense<0.000000e+00> : vector<8x256xf32>
    %77 = tpu.matmul %75, %3, %cst_19 {dimension_numbers = #tpu.dot_dimension_numbers<[1], [0], [0], [1], [0, 0, 1, 1], [], []>} : vector<8x64xf32>, vector<64x256xf32>, vector<8x256xf32> -> vector<8x256xf32>
    %78 = arith.addf %76, %77 : vector<8x256xf32>
    %79 = arith.negf %78 : vector<8x256xf32>
    %80 = math.exp %79 : vector<8x256xf32>
    %cst_20 = arith.constant 1.000000e+00 : f32
    %81 = vector.broadcast %cst_20 : f32 to vector<8x256xf32>
    %82 = arith.addf %81, %80 : vector<8x256xf32>
    %83 = arith.divf %81, %82 : vector<8x256xf32>
    %84 = vector.extract_strided_slice %83 {offsets = [0, 0], sizes = [8, 64], strides = [1, 1]} : vector<8x256xf32> to vector<8x64xf32>
    %85 = vector.extract_strided_slice %83 {offsets = [0, 64], sizes = [8, 64], strides = [1, 1]} : vector<8x256xf32> to vector<8x64xf32>
    %86 = vector.extract_strided_slice %83 {offsets = [0, 128], sizes = [8, 64], strides = [1, 1]} : vector<8x256xf32> to vector<8x64xf32>
    %cst_21 = arith.constant 2.000000e+00 : f32
    %87 = vector.broadcast %cst_21 : f32 to vector<8x64xf32>
    %88 = arith.mulf %87, %86 : vector<8x64xf32>
    %cst_22 = arith.constant 1.000000e+00 : f32
    %89 = vector.broadcast %cst_22 : f32 to vector<8x64xf32>
    %90 = arith.subf %88, %89 : vector<8x64xf32>
    %91 = vector.extract_strided_slice %83 {offsets = [0, 192], sizes = [8, 64], strides = [1, 1]} : vector<8x256xf32> to vector<8x64xf32>
    %92 = arith.mulf %85, %73 : vector<8x64xf32>
    %93 = arith.mulf %84, %90 : vector<8x64xf32>
    %94 = arith.addf %92, %93 : vector<8x64xf32>
    %95 = math.tanh %94 : vector<8x64xf32>
    %96 = arith.mulf %91, %95 : vector<8x64xf32>
    %97 = vector.extract_strided_slice %2 {offsets = [32, 0], sizes = [8, 256], strides = [1, 1]} : vector<72x256xf32> to vector<8x256xf32>
    %cst_23 = arith.constant dense<0.000000e+00> : vector<8x256xf32>
    %98 = tpu.matmul %96, %3, %cst_23 {dimension_numbers = #tpu.dot_dimension_numbers<[1], [0], [0], [1], [0, 0, 1, 1], [], []>} : vector<8x64xf32>, vector<64x256xf32>, vector<8x256xf32> -> vector<8x256xf32>
    %99 = arith.addf %97, %98 : vector<8x256xf32>
    %100 = arith.negf %99 : vector<8x256xf32>
    %101 = math.exp %100 : vector<8x256xf32>
    %cst_24 = arith.constant 1.000000e+00 : f32
    %102 = vector.broadcast %cst_24 : f32 to vector<8x256xf32>
    %103 = arith.addf %102, %101 : vector<8x256xf32>
    %104 = arith.divf %102, %103 : vector<8x256xf32>
    %105 = vector.extract_strided_slice %104 {offsets = [0, 0], sizes = [8, 64], strides = [1, 1]} : vector<8x256xf32> to vector<8x64xf32>
    %106 = vector.extract_strided_slice %104 {offsets = [0, 64], sizes = [8, 64], strides = [1, 1]} : vector<8x256xf32> to vector<8x64xf32>
    %107 = vector.extract_strided_slice %104 {offsets = [0, 128], sizes = [8, 64], strides = [1, 1]} : vector<8x256xf32> to vector<8x64xf32>
    %cst_25 = arith.constant 2.000000e+00 : f32
    %108 = vector.broadcast %cst_25 : f32 to vector<8x64xf32>
    %109 = arith.mulf %108, %107 : vector<8x64xf32>
    %cst_26 = arith.constant 1.000000e+00 : f32
    %110 = vector.broadcast %cst_26 : f32 to vector<8x64xf32>
    %111 = arith.subf %109, %110 : vector<8x64xf32>
    %112 = vector.extract_strided_slice %104 {offsets = [0, 192], sizes = [8, 64], strides = [1, 1]} : vector<8x256xf32> to vector<8x64xf32>
    %113 = arith.mulf %106, %94 : vector<8x64xf32>
    %114 = arith.mulf %105, %111 : vector<8x64xf32>
    %115 = arith.addf %113, %114 : vector<8x64xf32>
    %116 = math.tanh %115 : vector<8x64xf32>
    %117 = arith.mulf %112, %116 : vector<8x64xf32>
    %118 = vector.extract_strided_slice %2 {offsets = [40, 0], sizes = [8, 256], strides = [1, 1]} : vector<72x256xf32> to vector<8x256xf32>
    %cst_27 = arith.constant dense<0.000000e+00> : vector<8x256xf32>
    %119 = tpu.matmul %117, %3, %cst_27 {dimension_numbers = #tpu.dot_dimension_numbers<[1], [0], [0], [1], [0, 0, 1, 1], [], []>} : vector<8x64xf32>, vector<64x256xf32>, vector<8x256xf32> -> vector<8x256xf32>
    %120 = arith.addf %118, %119 : vector<8x256xf32>
    %121 = arith.negf %120 : vector<8x256xf32>
    %122 = math.exp %121 : vector<8x256xf32>
    %cst_28 = arith.constant 1.000000e+00 : f32
    %123 = vector.broadcast %cst_28 : f32 to vector<8x256xf32>
    %124 = arith.addf %123, %122 : vector<8x256xf32>
    %125 = arith.divf %123, %124 : vector<8x256xf32>
    %126 = vector.extract_strided_slice %125 {offsets = [0, 0], sizes = [8, 64], strides = [1, 1]} : vector<8x256xf32> to vector<8x64xf32>
    %127 = vector.extract_strided_slice %125 {offsets = [0, 64], sizes = [8, 64], strides = [1, 1]} : vector<8x256xf32> to vector<8x64xf32>
    %128 = vector.extract_strided_slice %125 {offsets = [0, 128], sizes = [8, 64], strides = [1, 1]} : vector<8x256xf32> to vector<8x64xf32>
    %cst_29 = arith.constant 2.000000e+00 : f32
    %129 = vector.broadcast %cst_29 : f32 to vector<8x64xf32>
    %130 = arith.mulf %129, %128 : vector<8x64xf32>
    %cst_30 = arith.constant 1.000000e+00 : f32
    %131 = vector.broadcast %cst_30 : f32 to vector<8x64xf32>
    %132 = arith.subf %130, %131 : vector<8x64xf32>
    %133 = vector.extract_strided_slice %125 {offsets = [0, 192], sizes = [8, 64], strides = [1, 1]} : vector<8x256xf32> to vector<8x64xf32>
    %134 = arith.mulf %127, %115 : vector<8x64xf32>
    %135 = arith.mulf %126, %132 : vector<8x64xf32>
    %136 = arith.addf %134, %135 : vector<8x64xf32>
    %137 = math.tanh %136 : vector<8x64xf32>
    %138 = arith.mulf %133, %137 : vector<8x64xf32>
    %139 = vector.extract_strided_slice %2 {offsets = [48, 0], sizes = [8, 256], strides = [1, 1]} : vector<72x256xf32> to vector<8x256xf32>
    %cst_31 = arith.constant dense<0.000000e+00> : vector<8x256xf32>
    %140 = tpu.matmul %138, %3, %cst_31 {dimension_numbers = #tpu.dot_dimension_numbers<[1], [0], [0], [1], [0, 0, 1, 1], [], []>} : vector<8x64xf32>, vector<64x256xf32>, vector<8x256xf32> -> vector<8x256xf32>
    %141 = arith.addf %139, %140 : vector<8x256xf32>
    %142 = arith.negf %141 : vector<8x256xf32>
    %143 = math.exp %142 : vector<8x256xf32>
    %cst_32 = arith.constant 1.000000e+00 : f32
    %144 = vector.broadcast %cst_32 : f32 to vector<8x256xf32>
    %145 = arith.addf %144, %143 : vector<8x256xf32>
    %146 = arith.divf %144, %145 : vector<8x256xf32>
    %147 = vector.extract_strided_slice %146 {offsets = [0, 0], sizes = [8, 64], strides = [1, 1]} : vector<8x256xf32> to vector<8x64xf32>
    %148 = vector.extract_strided_slice %146 {offsets = [0, 64], sizes = [8, 64], strides = [1, 1]} : vector<8x256xf32> to vector<8x64xf32>
    %149 = vector.extract_strided_slice %146 {offsets = [0, 128], sizes = [8, 64], strides = [1, 1]} : vector<8x256xf32> to vector<8x64xf32>
    %cst_33 = arith.constant 2.000000e+00 : f32
    %150 = vector.broadcast %cst_33 : f32 to vector<8x64xf32>
    %151 = arith.mulf %150, %149 : vector<8x64xf32>
    %cst_34 = arith.constant 1.000000e+00 : f32
    %152 = vector.broadcast %cst_34 : f32 to vector<8x64xf32>
    %153 = arith.subf %151, %152 : vector<8x64xf32>
    %154 = vector.extract_strided_slice %146 {offsets = [0, 192], sizes = [8, 64], strides = [1, 1]} : vector<8x256xf32> to vector<8x64xf32>
    %155 = arith.mulf %148, %136 : vector<8x64xf32>
    %156 = arith.mulf %147, %153 : vector<8x64xf32>
    %157 = arith.addf %155, %156 : vector<8x64xf32>
    %158 = math.tanh %157 : vector<8x64xf32>
    %159 = arith.mulf %154, %158 : vector<8x64xf32>
    %160 = vector.extract_strided_slice %2 {offsets = [56, 0], sizes = [8, 256], strides = [1, 1]} : vector<72x256xf32> to vector<8x256xf32>
    %cst_35 = arith.constant dense<0.000000e+00> : vector<8x256xf32>
    %161 = tpu.matmul %159, %3, %cst_35 {dimension_numbers = #tpu.dot_dimension_numbers<[1], [0], [0], [1], [0, 0, 1, 1], [], []>} : vector<8x64xf32>, vector<64x256xf32>, vector<8x256xf32> -> vector<8x256xf32>
    %162 = arith.addf %160, %161 : vector<8x256xf32>
    %163 = arith.negf %162 : vector<8x256xf32>
    %164 = math.exp %163 : vector<8x256xf32>
    %cst_36 = arith.constant 1.000000e+00 : f32
    %165 = vector.broadcast %cst_36 : f32 to vector<8x256xf32>
    %166 = arith.addf %165, %164 : vector<8x256xf32>
    %167 = arith.divf %165, %166 : vector<8x256xf32>
    %168 = vector.extract_strided_slice %167 {offsets = [0, 0], sizes = [8, 64], strides = [1, 1]} : vector<8x256xf32> to vector<8x64xf32>
    %169 = vector.extract_strided_slice %167 {offsets = [0, 64], sizes = [8, 64], strides = [1, 1]} : vector<8x256xf32> to vector<8x64xf32>
    %170 = vector.extract_strided_slice %167 {offsets = [0, 128], sizes = [8, 64], strides = [1, 1]} : vector<8x256xf32> to vector<8x64xf32>
    %cst_37 = arith.constant 2.000000e+00 : f32
    %171 = vector.broadcast %cst_37 : f32 to vector<8x64xf32>
    %172 = arith.mulf %171, %170 : vector<8x64xf32>
    %cst_38 = arith.constant 1.000000e+00 : f32
    %173 = vector.broadcast %cst_38 : f32 to vector<8x64xf32>
    %174 = arith.subf %172, %173 : vector<8x64xf32>
    %175 = vector.extract_strided_slice %167 {offsets = [0, 192], sizes = [8, 64], strides = [1, 1]} : vector<8x256xf32> to vector<8x64xf32>
    %176 = arith.mulf %169, %157 : vector<8x64xf32>
    %177 = arith.mulf %168, %174 : vector<8x64xf32>
    %178 = arith.addf %176, %177 : vector<8x64xf32>
    %179 = math.tanh %178 : vector<8x64xf32>
    %180 = arith.mulf %175, %179 : vector<8x64xf32>
    %181 = vector.extract_strided_slice %2 {offsets = [64, 0], sizes = [8, 256], strides = [1, 1]} : vector<72x256xf32> to vector<8x256xf32>
    %cst_39 = arith.constant dense<0.000000e+00> : vector<8x256xf32>
    %182 = tpu.matmul %180, %3, %cst_39 {dimension_numbers = #tpu.dot_dimension_numbers<[1], [0], [0], [1], [0, 0, 1, 1], [], []>} : vector<8x64xf32>, vector<64x256xf32>, vector<8x256xf32> -> vector<8x256xf32>
    %183 = arith.addf %181, %182 : vector<8x256xf32>
    %184 = arith.negf %183 : vector<8x256xf32>
    %185 = math.exp %184 : vector<8x256xf32>
    %cst_40 = arith.constant 1.000000e+00 : f32
    %186 = vector.broadcast %cst_40 : f32 to vector<8x256xf32>
    %187 = arith.addf %186, %185 : vector<8x256xf32>
    %188 = arith.divf %186, %187 : vector<8x256xf32>
    %189 = vector.extract_strided_slice %188 {offsets = [0, 0], sizes = [8, 64], strides = [1, 1]} : vector<8x256xf32> to vector<8x64xf32>
    %190 = vector.extract_strided_slice %188 {offsets = [0, 64], sizes = [8, 64], strides = [1, 1]} : vector<8x256xf32> to vector<8x64xf32>
    %191 = vector.extract_strided_slice %188 {offsets = [0, 128], sizes = [8, 64], strides = [1, 1]} : vector<8x256xf32> to vector<8x64xf32>
    %cst_41 = arith.constant 2.000000e+00 : f32
    %192 = vector.broadcast %cst_41 : f32 to vector<8x64xf32>
    %193 = arith.mulf %192, %191 : vector<8x64xf32>
    %cst_42 = arith.constant 1.000000e+00 : f32
    %194 = vector.broadcast %cst_42 : f32 to vector<8x64xf32>
    %195 = arith.subf %193, %194 : vector<8x64xf32>
    %196 = vector.extract_strided_slice %188 {offsets = [0, 192], sizes = [8, 64], strides = [1, 1]} : vector<8x256xf32> to vector<8x64xf32>
    %197 = arith.mulf %190, %178 : vector<8x64xf32>
    %198 = arith.mulf %189, %195 : vector<8x64xf32>
    %199 = arith.addf %197, %198 : vector<8x64xf32>
    %200 = math.tanh %199 : vector<8x64xf32>
    %201 = arith.mulf %196, %200 : vector<8x64xf32>
    %202 = vector.extract_strided_slice %201 {offsets = [0, 32], sizes = [8, 32], strides = [1, 1]} : vector<8x64xf32> to vector<8x32xf32>
    %c0_43 = arith.constant 0 : index
    %c0_44 = arith.constant 0 : index
    %203 = vector.load %arg3[%c0_43, %c0_44] : memref<33x4xf32, #tpu.memory_space<vmem>>, vector<32x4xf32>
    %cst_45 = arith.constant dense<0.000000e+00> : vector<8x4xf32>
    %204 = tpu.matmul %202, %203, %cst_45 {dimension_numbers = #tpu.dot_dimension_numbers<[1], [0], [0], [1], [0, 0, 1, 1], [], []>} : vector<8x32xf32>, vector<32x4xf32>, vector<8x4xf32> -> vector<8x4xf32>
    %205 = vector.extract_strided_slice %204 {offsets = [0, 0], sizes = [2, 4], strides = [1, 1]} : vector<8x4xf32> to vector<2x4xf32>
    %c32 = arith.constant 32 : index
    %c0_46 = arith.constant 0 : index
    %206 = vector.load %arg3[%c32, %c0_46] : memref<33x4xf32, #tpu.memory_space<vmem>>, vector<1x4xf32>
    %207 = vector.broadcast %206 : vector<1x4xf32> to vector<2x4xf32>
    %208 = arith.addf %205, %207 : vector<2x4xf32>
    %c0_47 = arith.constant 0 : index
    %c0_48 = arith.constant 0 : index
    %209 = vector.load %arg4[%c0_47, %c0_48] : memref<2x4xf32, #tpu.memory_space<vmem>>, vector<2x4xf32>
    tpu.vector_store %arg4[%c0_47, %c0_48], %208 {strides = array<i32>} : memref<2x4xf32, #tpu.memory_space<vmem>>, vector<2x4xf32>,
    return
  }
}

</mosaic_0001>

<bundles_post_ra>
// kernel: tpu_custom_call.1
= control target key start
LH: loop header
LB: loop body
LE: loop exit
PB: predicated region body
PF: predicated region fallthrough
CT: control target
= control target key end

     0   :  { %9 = vsyncpa [#allocation3], 0  ;;  %s1953_s0 = inlined_call_operand.vmem [shape: f32[72,17], index: 0, kind: input, shape index: {}]   ;;  %s1954_s1 = inlined_call_operand.hbm [shape: f32[17,256], index: 1, kind: input, shape index: {}]   ;;  %s1955_s2 = inlined_call_operand.vmem [shape: f32[64,256], index: 2, kind: input, shape index: {}]   ;;  %s1956_s3 = inlined_call_operand.vmem [shape: f32[33,4], index: 3, kind: input, shape index: {}]   ;;  %s1957_s4 = inlined_call_operand.hbm [shape: f32[2,4], index: 4, kind: output, shape index: {}]  }
   0x1   :  { %10 = vsyncpa [#allocation4], 0  ;;  %s1623_s15 = smov [#allocation2]   ;;  %s1575_s19 = scalar_lea.hbm %s1954_s1, 768 }
   0x2   :  { %s18_s16 = sshll.u32 %s1623_s15, 4  ;;  %p1576_p0 = scmp.ne.s32.totalorder %s1954_s1, %s1575_s19  ;;  %s19_s16 = int_to_ptr.vmem [resolvable:$true] %s18_s16 }
   0x3   :  { %p1579_p1 = scmp.lt.u32.totalorder %s1575_s19, %s1954_s1 }
   0x5   :  { %p1581_p2 = pnand %p1579_p1, %p1576_p0 }
   0x7   :  { %1584 = shalt.err (!%p1581_p2)
}
   0x8   :  { %s1585_s24 = scalar_lea.vmem %s19_s16, 768  ;;  %p1590_p4 = scmp.lt.s32.totalorder %s19_s16, %s19_s16 }
   0x9   :  { %p1586_p3 = scmp.ne.s32.totalorder %s19_s16, %s1585_s24  ;;  %p1591_p5 = scmp.lt.s32.totalorder %s1585_s24, %s1585_s24 }
   0xb   :  { %p1592_p6 = por %p1591_p5, %p1590_p4 }
   0xd   :  { %p1593_p7 = pnand %p1592_p6, %p1586_p3 }
   0xf   :  { %1596 = shalt.err (!%p1593_p7)
}
  0x10   :  { %s1624_s25 = smov 256   ;;  %s1625_s26 = smov 16  }
  0x11   :  { %24 = dma.hbm_to_vmem [thread:$0]  %s1954_s1, 768, %s19_s16, [#allocation3], %s1624_s25, %s1624_s25, %s1625_s26  }
  0x12   :  { %1619 = dma.done.wait [#allocation3], 768  }
  0x13   :  { %1620 = vsyncadd [#allocation3], 4294966528  ;;  %v1626_v0 = vmov 0.0   ;;  %v42_v1 = vld [vmem:[#allocation2 + $0x8] sm:$0xff]  ;;  %v44_v2 = vld [vmem:[#allocation2 + $0x18] sm:$0xff]  ;;  %vm75_vm0 = vcmask 1040384   ;;  %v217_v62 = vlaneseq }
  0x14   :  { %146 = vmatprep.mubr.f32.mxu1 %v1626_v0  ;;  %599 = vmatprep.mubr.f32.mxu0 %v1626_v0  ;;  %v41_v3 = vld [vmem:[#allocation2] sm:$0xff]  ;;  %v1304_v4 = vpack.c.bf16 %v44_v2, %v42_v1  ;;  %v43_v5 = vld [vmem:[#allocation2 + $0x10] sm:$0xff]  ;;  %v46_v7 = vld [vmem:[#allocation2 + $0x28] sm:$0x1]  ;;  %vm47_vm1 = vcmask 138240   ;;  %vm222_vm3 = vcmask 523264  }
  0x15   :  { %v1306_v6 = vpack.c.bf16 %v43_v5, %v41_v3  ;;  %v202_v8 = vld [vmem:[%s1955_s2 + $0x8] sm:$0xff]  ;;  %v204_v9 = vld [vmem:[%s1955_s2 + $0x18] sm:$0xff]  ;;  %v201_v11 = vld [vmem:[%s1955_s2] sm:$0xff]  ;;  %v218_v2 = vand.u32 127, %v217_v62  ;;  %vm1629_vm4 = vmmov 0   ;;  %s1630_s5 = smov 32  }
  0x16   :  { %1305 = vmatprep.subr.bf16.mxu1 %v1304_v4  ;;  %v1677_v10 = vpack.c.bf16 %v204_v9, %v202_v8  ;;  %v203_v12 = vld [vmem:[%s1955_s2 + $0x10] sm:$0xff]  ;;  %v206_v14 = vld [vmem:[%s1955_s2 + $0x28] sm:$0xff]  ;;  %v208_v15 = vld [vmem:[%s1955_s2 + $0x38] sm:$0xff]  ;;  %vm1143_vm5 = vcmask 261120   ;;  %s1631_s8 = smov [#allocation5]   ;;  %vm1222_vm6 = vcmask 25600  }
  0x17   :  { %1307 = vmatpush1.bf16.msra.mxu1 %v1306_v6  ;;  %v1685_v13 = vpack.c.bf16 %v203_v12, %v201_v11  ;;  %v45_v16 = vld [vmem:[#allocation2 + $0x20] sm:$0x1]  ;;  %v1694_v17 = vpack.c.bf16 %v208_v15, %v206_v14  ;;  %v207_v20 = vld [vmem:[%s1955_s2 + $0x30] sm:$0xff]  ;;  %v210_v21 = vld [vmem:[%s1955_s2 + $0x48] sm:$0xff]  ;;  %vm219_vm2 = vcmp.lt.s32.totalorder %v218_v2, 32  ;;  %s1230_s9 = sshll.u32 %s1631_s8, 4  ;;  %s1231_s9 = int_to_ptr.vmem [resolvable:$true] %s1230_s9 }
  0x18   :  { %1239 = vmatprep.subr.msk.mxu1 %vm75_vm0, %v46_v7  ;;  %1357 = vmatprep.subr.bf16.mxu0 %v1677_v10  ;;  %v32_v18 = vld [vmem:[%s1953_s0] sm:$0xff]  ;;  %v212_v22 = vld [vmem:[%s1955_s2 + $0x58] sm:$0xff]  ;;  %v33_v24 = vld [vmem:[%s1953_s0 + $0x8] sm:$0xff]  ;;  %v1250_v6 = vsel %vm219_vm2, 1.0, %v1626_v0  ;;  %s1597_s10 = scalar_lea.vmem %s1231_s9, 32  ;;  %p1602_p9 = scmp.lt.s32.totalorder %s1231_s9, %s1231_s9 }
  0x19   :  { %v205_v19 = vld [vmem:[%s1955_s2 + $0x20] sm:$0xff]  ;;  %1359 = vmatpush1.bf16.msra.mxu0 %v1685_v13  ;;  %v1724_v25 = vpack.c.bf16 %v212_v22, %v210_v21  ;;  %v211_v27 = vld [vmem:[%s1955_s2 + $0x50] sm:$0xff]  ;;  %v214_v28 = vld [vmem:[%s1955_s2 + $0x68] sm:$0xff]  ;;  %p1598_p8 = scmp.ne.s32.totalorder %s1231_s9, %s1597_s10  ;;  %p1603_p10 = scmp.lt.s32.totalorder %s1597_s10, %s1597_s10 }
  0x1a   :  { %1361 = vmatprep.subr.bf16.mxu0 %v1694_v17  ;;  %v1717_v23 = vpack.c.bf16 %v207_v20, %v205_v19  ;;  %v209_v26 = vld [vmem:[%s1955_s2 + $0x40] sm:$0xff]  ;;  %v216_v29 = vld [vmem:[%s1955_s2 + $0x78] sm:$0xff]  ;;  %v34_v31 = vld [vmem:[%s1953_s0 + $0x10] sm:$0xff] }
  0x1b   :  { %1240 = vmatpush1.msk.msra.mxu1 %vm75_vm0, %v45_v16  ;;  %v1742_v30 = vpack.c.bf16 %v211_v27, %v209_v26  ;;  %v1749_v32 = vpack.c.bf16 %v216_v29, %v214_v28  ;;  %v213_v33 = vld [vmem:[%s1955_s2 + $0x60] sm:$0xff]  ;;  %v215_v34 = vld [vmem:[%s1955_s2 + $0x70] sm:$0xff]  ;;  %v35_v36 = vld [vmem:[%s1953_s0 + $0x18] sm:$0xff]  ;;  %p1604_p11 = por %p1603_p10, %p1602_p9 }
  0x1c   :  { %1241 = vmatmul.mubr.msk.f32.vlgmr.msra.gmra.mrb[0].mxu1 %vm47_vm1, %v32_v18  ;;  %1309 = vmatprep.subr.bf16.mxu1 %v1677_v10  ;;  %v1761_v35 = vpack.c.bf16 %v215_v34, %v213_v33  ;;  %v36_v37 = vld [vmem:[%s1953_s0 + $0x20] sm:$0xff]  ;;  %v37_v38 = vld [vmem:[%s1953_s0 + $0x28] sm:$0xff]  ;;  %v38_v39 = vld [vmem:[%s1953_s0 + $0x30] sm:$0xff] }
  0x1d   :  { %1311 = vmatpush1.bf16.msra.mxu1 %v1685_v13  ;;  %152 = vmatprep.mubr.f32.mxu1 %v1626_v0  ;;  %v39_v40 = vld [vmem:[%s1953_s0 + $0x38] sm:$0xff]  ;;  %v40_v41 = vld [vmem:[%s1953_s0 + $0x40] sm:$0xff]  ;;  %s1627_s0 = smov 64   ;;  %p1605_p12 = pnand %p1604_p11, %p1598_p8 }
  0x1e   :  { %1313 = vmatprep.subr.bf16.mxu1 %v1694_v17  ;;  %1363 = vmatpush1.bf16.msra.mxu0 %v1717_v23 }
  0x1f   :  { %1365 = vmatprep.subr.bf16.mxu0 %v1724_v25 }
  0x20   :  { %1242 = vmatmul.mubr.msk.f32.gmra.mrb[2].mxu1 %vm47_vm1, %v33_v24 }
  0x21   :  { %158 = vmatprep.mubr.f32.mxu1 %v1626_v0  ;;  %1315 = vmatpush1.bf16.msra.mxu1 %v1717_v23 }
  0x22   :  { %1317 = vmatprep.subr.bf16.mxu1 %v1724_v25  ;;  %1367 = vmatpush1.bf16.msra.mxu0 %v1742_v30 }
  0x23   :  { %1369 = vmatprep.subr.bf16.mxu0 %v1749_v32 }
  0x24   :  { %1243 = vmatmul.mubr.msk.f32.gmra.mrb[4].mxu1 %vm47_vm1, %v34_v31 }
  0x25   :  { %164 = vmatprep.mubr.f32.mxu1 %v1626_v0  ;;  %1319 = vmatpush1.bf16.msra.mxu1 %v1742_v30 }
  0x26   :  { %1321 = vmatprep.subr.bf16.mxu1 %v1749_v32  ;;  %1371 = vmatpush1.bf16.msra.mxu0 %v1761_v35 }
  0x27   :  { %1373 = vmatprep.subr.bf16.mxu0 %v1677_v10 }
  0x28   :  { %1244 = vmatmul.mubr.msk.f32.gmra.mrb[6].mxu1 %vm47_vm1, %v35_v36 }
  0x29   :  { %170 = vmatprep.mubr.f32.mxu1 %v1626_v0  ;;  %1323 = vmatpush1.bf16.msra.mxu1 %v1761_v35 }
  0x2a   :  { %1325 = vmatprep.subr.bf16.mxu1 %v1677_v10 }
  0x2c   :  { %1245 = vmatmul.mubr.msk.f32.gmra.mrb[8].mxu1 %vm47_vm1, %v36_v37 }
  0x2d   :  { %176 = vmatprep.mubr.f32.mxu1 %v1626_v0 }
  0x30   :  { %1246 = vmatmul.mubr.msk.f32.gmra.mrb[10].mxu1 %vm47_vm1, %v37_v38 }
  0x31   :  { %182 = vmatprep.mubr.f32.mxu1 %v1626_v0 }
  0x34   :  { %1247 = vmatmul.mubr.msk.f32.gmra.mrb[12].mxu1 %vm47_vm1, %v38_v39 }
  0x35   :  { %188 = vmatprep.mubr.f32.mxu1 %v1626_v0 }
  0x38   :  { %1248 = vmatmul.mubr.msk.f32.gmra.mrb[14].mxu1 %vm47_vm1, %v39_v40 }
  0x39   :  { %194 = vmatprep.mubr.f32.mxu1 %v1626_v0 }
  0x3c   :  { %1249 = vmatmul.mubr.msk.f32.gmra.mrb[16].mxu1 %vm47_vm1, %v40_v41 }
  0x3d   :  { %290 = vmatprep.mubr.f32.mxu1 %v1626_v0 }
  0x40   :  { %291 = vmatmul.mubr.f32.vlgmr.msra.gmra.mrb[0].mxu1 %v1626_v0 }
  0x41   :  { %1327 = vmatpush1.bf16.msra.mxu1 %v1685_v13  ;;  %397 = vmatprep.mubr.f32.mxu1 %v1626_v0 }
  0x42   :  { %1329 = vmatprep.subr.bf16.mxu1 %v1694_v17 }
  0x45   :  { %1331 = vmatpush1.bf16.msra.mxu1 %v1717_v23 }
  0x46   :  { %1333 = vmatprep.subr.bf16.mxu1 %v1724_v25 }
  0x49   :  { %1335 = vmatpush1.bf16.msra.mxu1 %v1742_v30 }
  0x4a   :  { %1337 = vmatprep.subr.bf16.mxu1 %v1749_v32 }
  0x4d   :  { %1339 = vmatpush1.bf16.msra.mxu1 %v1761_v35 }
  0x4e   :  { %1341 = vmatprep.subr.bf16.mxu1 %v1677_v10 }
  0xfb   :  { %v1810_v42 = vpop.f32.mrb[6].mxu1 }
  0xfc   :  { %v1812_v43 = vpop.f32.mrb[7].mxu1 }
  0xff   :  { %v1814_v44 = vpop.f32.mrb[8].mxu1 }
 0x100   :  { %v1816_v45 = vpop.f32.mrb[9].mxu1 }
 0x103   :  { %v1818_v46 = vpop.f32.mrb[10].mxu1 }
 0x104   :  { %v1820_v47 = vpop.f32.mrb[11].mxu1 }
 0x107   :  { %v1822_v48 = vpop.f32.mrb[12].mxu1 }
 0x108   :  { %v1824_v49 = vpop.f32.mrb[13].mxu1 }
 0x10b   :  { %v1826_v50 = vpop.f32.mrb[14].mxu1 }
 0x10c   :  { %v1828_v51 = vpop.f32.mrb[15].mxu1 }
 0x10f   :  { %v1830_v52 = vpop.f32.mrb[16].mxu1 }
 0x110   :  { %v1832_v53 = vpop.f32.mrb[17].mxu1 }
 0x113   :  { %v292_v54 = vpop.f32.mrb[0].mxu1 }
 0x114   :  { %v1251_v55 = vmul.f32 -1.442695, %v292_v54  ;;  %v294_v56 = vpop.f32.mrb[1].mxu1 }
 0x115   :  { %v1252_v57 = vmul.f32 -1.442695, %v294_v56 }
 0x116   :  { %1485 = vpow2.f32 %v1251_v55 }
 0x117   :  { %1487 = vpow2.f32 %v1252_v57 }
 0x120   :  { %v1486_v58 = vpop.eup %1485 }
 0x121   :  { %v1488_v59 = vpop.eup %1487  ;;  %v305_v61 = vadd.f32 1.0, %v1486_v58 }
 0x122   :  { %v306_v60 = vadd.f32 1.0, %v1488_v59 }
 0x124   :  { %1489 = vrcp.f32 %v306_v60 }
 0x125   :  { %1491 = vrcp.f32 %v305_v61 }
 0x12e   :  { %v1490_v63 = vpop.eup %1489 }
 0x12f   :  { %v311_v1 = vmul.f32 2.0, %v1490_v63  ;;  %v1492_v4 = vpop.eup %1491 }
 0x130   :  { %v313_v7 = vmul.f32 0.0, %v1492_v4 }
 0x131   :  { %v1253_v3 = vadd.f32 -1.0, %v311_v1 }
 0x133   :  { %v314_v5 = vmul.f32 %v1492_v4, %v1253_v3 }
 0x135   :  { %316 = vrot.lane.b32.xlu0 %v314_v5, %s1627_s0 }
 0x139   :  { %323 = vrot.lane.b32.xlu0 %v1250_v6, %s1627_s0 }
 0x1a7   :  { %v317_v8 = vpop.permute.xlu0 %316 }
 0x1a8   :  { %v319_v9 = vadd.f32 %v317_v8, %v313_v7 }
 0x1aa   :  { %1493 = vtanh.f32 %v319_v9 }
 0x1ab   :  { %v324_v14 = vpop.permute.xlu0 %323 }
 0x1ac   :  { %v327_v28 = vmul.f32 %v324_v14, %v319_v9 }
 0x1b4   :  { %v1494_v11 = vpop.eup %1493 }
 0x1b5   :  { %v321_v12 = vmul.f32 %v1494_v11, %v1490_v63 }
 0x1b7   :  { %v326_v15 = vmul.f32 %v324_v14, %v321_v12 }
 0x1b9   :  { %329 = vrot.lane.b32.xlu1 %v326_v15, %s1627_s0 }
 0x22b   :  { %v330_v16 = vpop.permute.xlu1 %329 }
 0x22c   :  { %1254 = vmatmul.mubr.msk.f32.vlgmr.msra.gmra.mrb[2].mxu1 %vm222_vm3, %v330_v16 }
 0x22d   :  { %1343 = vmatpush1.bf16.msra.mxu1 %v1685_v13  ;;  %498 = vmatprep.mubr.f32.mxu1 %v1626_v0 }
 0x22e   :  { %1345 = vmatprep.subr.bf16.mxu1 %v1694_v17 }
 0x231   :  { %1347 = vmatpush1.bf16.msra.mxu1 %v1717_v23 }
 0x232   :  { %1349 = vmatprep.subr.bf16.mxu1 %v1724_v25 }
 0x235   :  { %1351 = vmatpush1.bf16.msra.mxu1 %v1742_v30 }
 0x236   :  { %1353 = vmatprep.subr.bf16.mxu1 %v1749_v32 }
 0x239   :  { %1355 = vmatpush1.bf16.msra.mxu1 %v1761_v35 }
 0x2ff   :  { %v399_v18 = vpop.f32.mrb[2].mxu1 }
 0x300   :  { %v1255_v19 = vmul.f32 -1.442695, %v399_v18  ;;  %v401_v20 = vpop.f32.mrb[3].mxu1 }
 0x301   :  { %v1256_v21 = vmul.f32 -1.442695, %v401_v20 }
 0x302   :  { %1495 = vpow2.f32 %v1255_v19 }
 0x303   :  { %1497 = vpow2.f32 %v1256_v21 }
 0x30c   :  { %v1496_v22 = vpop.eup %1495 }
 0x30d   :  { %v1498_v24 = vpop.eup %1497  ;;  %v412_v26 = vadd.f32 1.0, %v1496_v22 }
 0x30e   :  { %v413_v27 = vadd.f32 1.0, %v1498_v24 }
 0x30f   :  { %1499 = vrcp.f32 %v412_v26 }
 0x310   :  { %1501 = vrcp.f32 %v413_v27 }
 0x319   :  { %v1500_v29 = vpop.eup %1499 }
 0x31a   :  { %v1502_v31 = vpop.eup %1501  ;;  %v420_v33 = vmul.f32 %v1500_v29, %v327_v28 }
 0x31b   :  { %v418_v34 = vmul.f32 2.0, %v1502_v31 }
 0x31d   :  { %v1257_v36 = vadd.f32 -1.0, %v418_v34 }
 0x31f   :  { %v421_v37 = vmul.f32 %v1500_v29, %v1257_v36 }
 0x321   :  { %423 = vrot.lane.b32.xlu1 %v421_v37, %s1627_s0 }
 0x393   :  { %v424_v38 = vpop.permute.xlu1 %423 }
 0x394   :  { %v426_v39 = vadd.f32 %v424_v38, %v420_v33 }
 0x396   :  { %1503 = vtanh.f32 %v426_v39 }
 0x3a0   :  { %v1504_v40 = vpop.eup %1503 }
 0x3a1   :  { %v428_v41 = vmul.f32 %v1504_v40, %v1502_v31 }
 0x3a3   :  { %430 = vrot.lane.b32.xlu0 %v428_v41, %s1627_s0 }
 0x415   :  { %v431_v54 = vpop.permute.xlu0 %430 }
 0x416   :  { %1258 = vmatmul.mubr.msk.f32.vlgmr.msra.gmra.mrb[4].mxu1 %vm222_vm3, %v431_v54 }
 0x417   :  { %1301 = vmatprep.mubr.msk.f32.mxu1 %vm1629_vm4, %v1626_v0 }
 0x4e9   :  { %v500_v55 = vpop.f32.mrb[4].mxu1 }
 0x4ea   :  { %v1259_v56 = vmul.f32 -1.442695, %v500_v55  ;;  %v502_v57 = vpop.f32.mrb[5].mxu1 }
 0x4eb   :  { %v1260_v58 = vmul.f32 -1.442695, %v502_v57 }
 0x4ec   :  { %1505 = vpow2.f32 %v1259_v56 }
 0x4ed   :  { %1507 = vpow2.f32 %v1260_v58 }
 0x4f6   :  { %v1506_v59 = vpop.eup %1505 }
 0x4f7   :  { %v1508_v60 = vpop.eup %1507  ;;  %v513_v62 = vadd.f32 1.0, %v1506_v59 }
 0x4f8   :  { %v514_v61 = vadd.f32 1.0, %v1508_v60 }
 0x4fa   :  { %1509 = vrcp.f32 %v514_v61 }
 0x4fb   :  { %1511 = vrcp.f32 %v513_v62 }
 0x504   :  { %v1510_v63 = vpop.eup %1509 }
 0x505   :  { %v519_v1 = vmul.f32 2.0, %v1510_v63  ;;  %v1512_v3 = vpop.eup %1511 }
 0x506   :  { %v521_v5 = vmul.f32 %v1512_v3, %v426_v39 }
 0x507   :  { %v1261_v2 = vadd.f32 -1.0, %v519_v1 }
 0x509   :  { %v522_v4 = vmul.f32 %v1512_v3, %v1261_v2 }
 0x50b   :  { %524 = vrot.lane.b32.xlu1 %v522_v4, %s1627_s0 }
 0x57d   :  { %v525_v6 = vpop.permute.xlu1 %524 }
 0x57e   :  { %v527_v7 = vadd.f32 %v525_v6, %v521_v5 }
 0x580   :  { %1513 = vtanh.f32 %v527_v7 }
 0x58a   :  { %v1514_v8 = vpop.eup %1513 }
 0x58b   :  { %v529_v9 = vmul.f32 %v1514_v8, %v1510_v63 }
 0x58d   :  { %531 = vrot.lane.b32.xlu0 %v529_v9, %s1627_s0 }
 0x5ff   :  { %v532_v11 = vpop.permute.xlu0 %531 }
 0x600   :  { %1262 = vmatmul.mubr.msk.f32.vlgmr.msra.gmra.mrb[0].mxu0 %vm222_vm3, %v532_v11 }
 0x601   :  { %1375 = vmatpush1.bf16.msra.mxu0 %v1685_v13  ;;  %700 = vmatprep.mubr.f32.mxu0 %v1626_v0 }
 0x602   :  { %1377 = vmatprep.subr.bf16.mxu0 %v1694_v17 }
 0x605   :  { %1379 = vmatpush1.bf16.msra.mxu0 %v1717_v23 }
 0x606   :  { %1381 = vmatprep.subr.bf16.mxu0 %v1724_v25 }
 0x609   :  { %1383 = vmatpush1.bf16.msra.mxu0 %v1742_v30 }
 0x60a   :  { %1385 = vmatprep.subr.bf16.mxu0 %v1749_v32 }
 0x60d   :  { %1387 = vmatpush1.bf16.msra.mxu0 %v1761_v35 }
 0x60e   :  { %1389 = vmatprep.subr.bf16.mxu0 %v1677_v10 }
 0x6d3   :  { %v601_v12 = vpop.f32.mrb[0].mxu0 }
 0x6d4   :  { %v606_v14 = vadd.f32 %v601_v12, %v1810_v42  ;;  %v603_v15 = vpop.f32.mrb[1].mxu0 }
 0x6d5   :  { %v607_v16 = vadd.f32 %v603_v15, %v1812_v43 }
 0x6d6   :  { %v1263_v18 = vmul.f32 -1.442695, %v606_v14 }
 0x6d7   :  { %v1264_v19 = vmul.f32 -1.442695, %v607_v16 }
 0x6d8   :  { %1515 = vpow2.f32 %v1263_v18 }
 0x6d9   :  { %1517 = vpow2.f32 %v1264_v19 }
 0x6e2   :  { %v1516_v20 = vpop.eup %1515 }
 0x6e3   :  { %v1518_v21 = vpop.eup %1517  ;;  %v614_v24 = vadd.f32 1.0, %v1516_v20 }
 0x6e4   :  { %v615_v22 = vadd.f32 1.0, %v1518_v21 }
 0x6e6   :  { %1519 = vrcp.f32 %v615_v22 }
 0x6e7   :  { %1521 = vrcp.f32 %v614_v24 }
 0x6f0   :  { %v1520_v26 = vpop.eup %1519 }
 0x6f1   :  { %v620_v27 = vmul.f32 2.0, %v1520_v26  ;;  %v1522_v29 = vpop.eup %1521 }
 0x6f2   :  { %v622_v42 = vmul.f32 %v1522_v29, %v527_v7 }
 0x6f3   :  { %v1265_v28 = vadd.f32 -1.0, %v620_v27 }
 0x6f5   :  { %v623_v31 = vmul.f32 %v1522_v29, %v1265_v28 }
 0x6f7   :  { %625 = vrot.lane.b32.xlu1 %v623_v31, %s1627_s0 }
 0x769   :  { %v626_v33 = vpop.permute.xlu1 %625 }
 0x76a   :  { %v628_v43 = vadd.f32 %v626_v33, %v622_v42 }
 0x76c   :  { %1523 = vtanh.f32 %v628_v43 }
 0x776   :  { %v1524_v34 = vpop.eup %1523 }
 0x777   :  { %v630_v36 = vmul.f32 %v1524_v34, %v1520_v26 }
 0x779   :  { %632 = vrot.lane.b32.xlu0 %v630_v36, %s1627_s0 }
 0x7eb   :  { %v633_v37 = vpop.permute.xlu0 %632 }
 0x7ec   :  { %1266 = vmatmul.mubr.msk.f32.vlgmr.msra.gmra.mrb[2].mxu0 %vm222_vm3, %v633_v37 }
 0x7ed   :  { %1391 = vmatpush1.bf16.msra.mxu0 %v1685_v13  ;;  %801 = vmatprep.mubr.f32.mxu0 %v1626_v0 }
 0x7ee   :  { %1393 = vmatprep.subr.bf16.mxu0 %v1694_v17 }
 0x7f1   :  { %1395 = vmatpush1.bf16.msra.mxu0 %v1717_v23 }
 0x7f2   :  { %1397 = vmatprep.subr.bf16.mxu0 %v1724_v25 }
 0x7f5   :  { %1399 = vmatpush1.bf16.msra.mxu0 %v1742_v30 }
 0x7f6   :  { %1401 = vmatprep.subr.bf16.mxu0 %v1749_v32 }
 0x7f9   :  { %1403 = vmatpush1.bf16.msra.mxu0 %v1761_v35 }
 0x7fa   :  { %1405 = vmatprep.subr.bf16.mxu0 %v1677_v10 }
 0x8bf   :  { %v702_v38 = vpop.f32.mrb[2].mxu0 }
 0x8c0   :  { %v707_v39 = vadd.f32 %v702_v38, %v1814_v44  ;;  %v704_v40 = vpop.f32.mrb[3].mxu0 }
 0x8c1   :  { %v708_v41 = vadd.f32 %v704_v40, %v1816_v45 }
 0x8c2   :  { %v1267_v54 = vmul.f32 -1.442695, %v707_v39 }
 0x8c3   :  { %v1268_v55 = vmul.f32 -1.442695, %v708_v41 }
 0x8c4   :  { %1525 = vpow2.f32 %v1267_v54 }
 0x8c5   :  { %1527 = vpow2.f32 %v1268_v55 }
 0x8ce   :  { %v1526_v56 = vpop.eup %1525 }
 0x8cf   :  { %v1528_v57 = vpop.eup %1527  ;;  %v715_v59 = vadd.f32 1.0, %v1526_v56 }
 0x8d0   :  { %v716_v58 = vadd.f32 1.0, %v1528_v57 }
 0x8d2   :  { %1529 = vrcp.f32 %v716_v58 }
 0x8d3   :  { %1531 = vrcp.f32 %v715_v59 }
 0x8dc   :  { %v1530_v60 = vpop.eup %1529 }
 0x8dd   :  { %v721_v61 = vmul.f32 2.0, %v1530_v60  ;;  %v1532_v63 = vpop.eup %1531 }
 0x8de   :  { %v723_v44 = vmul.f32 %v1532_v63, %v628_v43 }
 0x8df   :  { %v1269_v62 = vadd.f32 -1.0, %v721_v61 }
 0x8e1   :  { %v724_v1 = vmul.f32 %v1532_v63, %v1269_v62 }
 0x8e3   :  { %726 = vrot.lane.b32.xlu1 %v724_v1, %s1627_s0 }
 0x955   :  { %v727_v2 = vpop.permute.xlu1 %726 }
 0x956   :  { %v729_v45 = vadd.f32 %v727_v2, %v723_v44 }
 0x958   :  { %1533 = vtanh.f32 %v729_v45 }
 0x962   :  { %v1534_v3 = vpop.eup %1533 }
 0x963   :  { %v731_v4 = vmul.f32 %v1534_v3, %v1530_v60 }
 0x965   :  { %733 = vrot.lane.b32.xlu0 %v731_v4, %s1627_s0 }
 0x9d7   :  { %v734_v5 = vpop.permute.xlu0 %733 }
 0x9d8   :  { %1270 = vmatmul.mubr.msk.f32.vlgmr.msra.gmra.mrb[4].mxu0 %vm222_vm3, %v734_v5 }
 0x9d9   :  { %1407 = vmatpush1.bf16.msra.mxu0 %v1685_v13  ;;  %902 = vmatprep.mubr.f32.mxu0 %v1626_v0 }
 0x9da   :  { %1409 = vmatprep.subr.bf16.mxu0 %v1694_v17 }
 0x9dd   :  { %1411 = vmatpush1.bf16.msra.mxu0 %v1717_v23 }
 0x9de   :  { %1413 = vmatprep.subr.bf16.mxu0 %v1724_v25 }
 0x9e1   :  { %1415 = vmatpush1.bf16.msra.mxu0 %v1742_v30 }
 0x9e2   :  { %1417 = vmatprep.subr.bf16.mxu0 %v1749_v32 }
 0x9e5   :  { %1419 = vmatpush1.bf16.msra.mxu0 %v1761_v35 }
 0x9e6   :  { %1421 = vmatprep.subr.bf16.mxu0 %v1677_v10 }
 0xaab   :  { %v803_v6 = vpop.f32.mrb[4].mxu0 }
 0xaac   :  { %v808_v7 = vadd.f32 %v803_v6, %v1818_v46  ;;  %v805_v8 = vpop.f32.mrb[5].mxu0 }
 0xaad   :  { %v809_v9 = vadd.f32 %v805_v8, %v1820_v47 }
 0xaae   :  { %v1271_v11 = vmul.f32 -1.442695, %v808_v7 }
 0xaaf   :  { %v1272_v12 = vmul.f32 -1.442695, %v809_v9 }
 0xab0   :  { %1535 = vpow2.f32 %v1271_v11 }
 0xab1   :  { %1537 = vpow2.f32 %v1272_v12 }
 0xaba   :  { %v1536_v14 = vpop.eup %1535 }
 0xabb   :  { %v1538_v15 = vpop.eup %1537  ;;  %v816_v18 = vadd.f32 1.0, %v1536_v14 }
 0xabc   :  { %v817_v16 = vadd.f32 1.0, %v1538_v15 }
 0xabe   :  { %1539 = vrcp.f32 %v817_v16 }
 0xabf   :  { %1541 = vrcp.f32 %v816_v18 }
 0xac8   :  { %v1540_v19 = vpop.eup %1539 }
 0xac9   :  { %v822_v20 = vmul.f32 2.0, %v1540_v19  ;;  %v1542_v22 = vpop.eup %1541 }
 0xaca   :  { %v824_v46 = vmul.f32 %v1542_v22, %v729_v45 }
 0xacb   :  { %v1273_v21 = vadd.f32 -1.0, %v822_v20 }
 0xacd   :  { %v825_v24 = vmul.f32 %v1542_v22, %v1273_v21 }
 0xacf   :  { %827 = vrot.lane.b32.xlu1 %v825_v24, %s1627_s0 }
 0xb41   :  { %v828_v26 = vpop.permute.xlu1 %827 }
 0xb42   :  { %v830_v47 = vadd.f32 %v828_v26, %v824_v46 }
 0xb44   :  { %1543 = vtanh.f32 %v830_v47 }
 0xb4e   :  { %v1544_v27 = vpop.eup %1543 }
 0xb4f   :  { %v832_v28 = vmul.f32 %v1544_v27, %v1540_v19  ;;  %v1628_v27 = vmov 0.0|0.0  }
 0xb50   :  { %1452 = vmatprep.subr.bf16.mxu1 %v1628_v27 }
 0xb51   :  { %834 = vrot.lane.b32.xlu0 %v832_v28, %s1627_s0 }
 0xbc3   :  { %v835_v29 = vpop.permute.xlu0 %834 }
 0xbc4   :  { %1274 = vmatmul.mubr.msk.f32.vlgmr.msra.gmra.mrb[6].mxu0 %vm222_vm3, %v835_v29  ;;  %v1139_v29 = vld [vmem:[%s1956_s3 + $0x18] sm:$0xff] }
 0xbc5   :  { %1423 = vmatpush1.bf16.msra.mxu0 %v1685_v13  ;;  %1003 = vmatprep.mubr.f32.mxu0 %v1626_v0 }
 0xbc6   :  { %1425 = vmatprep.subr.bf16.mxu0 %v1694_v17 }
 0xbc9   :  { %1427 = vmatpush1.bf16.msra.mxu0 %v1717_v23 }
 0xbca   :  { %1429 = vmatprep.subr.bf16.mxu0 %v1724_v25 }
 0xbcd   :  { %1431 = vmatpush1.bf16.msra.mxu0 %v1742_v30 }
 0xbce   :  { %1433 = vmatprep.subr.bf16.mxu0 %v1749_v32 }
 0xbd1   :  { %1435 = vmatpush1.bf16.msra.mxu0 %v1761_v35 }
 0xbd2   :  { %1437 = vmatprep.subr.bf16.mxu0 %v1677_v10 }
 0xc97   :  { %v904_v31 = vpop.f32.mrb[6].mxu0 }
 0xc98   :  { %v909_v42 = vadd.f32 %v904_v31, %v1822_v48  ;;  %v906_v33 = vpop.f32.mrb[7].mxu0 }
 0xc99   :  { %v910_v43 = vadd.f32 %v906_v33, %v1824_v49 }
 0xc9a   :  { %v1275_v34 = vmul.f32 -1.442695, %v909_v42 }
 0xc9b   :  { %v1276_v36 = vmul.f32 -1.442695, %v910_v43 }
 0xc9c   :  { %1545 = vpow2.f32 %v1275_v34 }
 0xc9d   :  { %1547 = vpow2.f32 %v1276_v36 }
 0xca6   :  { %v1546_v37 = vpop.eup %1545 }
 0xca7   :  { %v1548_v38 = vpop.eup %1547  ;;  %v917_v40 = vadd.f32 1.0, %v1546_v37 }
 0xca8   :  { %v918_v39 = vadd.f32 1.0, %v1548_v38  ;;  %v1287_v38 = vld [vmem:[%s1956_s3 + $0x20] ss:$0 sm:$0xff] }
 0xcaa   :  { %1549 = vrcp.f32 %v918_v39 }
 0xcab   :  { %1551 = vrcp.f32 %v917_v40 }
 0xcb4   :  { %v1550_v41 = vpop.eup %1549 }
 0xcb5   :  { %v923_v54 = vmul.f32 2.0, %v1550_v41  ;;  %v1552_v10 = vpop.eup %1551 }
 0xcb6   :  { %v925_v48 = vmul.f32 %v1552_v10, %v830_v47  ;;  %v1138_v47 = vld [vmem:[%s1956_s3 + $0x10] sm:$0xff] }
 0xcb7   :  { %v1277_v55 = vadd.f32 -1.0, %v923_v54  ;;  %v1456_v31 = vpack.c.bf16 %v1139_v29, %v1138_v47 }
 0xcb9   :  { %v926_v56 = vmul.f32 %v1552_v10, %v1277_v55 }
 0xcbb   :  { %928 = vrot.lane.b32.xlu1 %v926_v56, %s1627_s0 }
 0xd2d   :  { %v929_v57 = vpop.permute.xlu1 %928 }
 0xd2e   :  { %v931_v49 = vadd.f32 %v929_v57, %v925_v48 }
 0xd30   :  { %1553 = vtanh.f32 %v931_v49 }
 0xd3a   :  { %v1554_v58 = vpop.eup %1553 }
 0xd3b   :  { %v933_v59 = vmul.f32 %v1554_v58, %v1550_v41 }
 0xd3d   :  { %935 = vrot.lane.b32.xlu0 %v933_v59, %s1627_s0 }
 0xdaf   :  { %v936_v60 = vpop.permute.xlu0 %935 }
 0xdb0   :  { %1278 = vmatmul.mubr.msk.f32.vlgmr.msra.gmra.mrb[8].mxu0 %vm222_vm3, %v936_v60 }
 0xdb1   :  { %1439 = vmatpush1.bf16.msra.mxu0 %v1685_v13  ;;  %1104 = vmatprep.mubr.f32.mxu0 %v1626_v0 }
 0xdb2   :  { %1441 = vmatprep.subr.bf16.mxu0 %v1694_v17 }
 0xdb5   :  { %1443 = vmatpush1.bf16.msra.mxu0 %v1717_v23 }
 0xdb6   :  { %1445 = vmatprep.subr.bf16.mxu0 %v1724_v25 }
 0xdb9   :  { %1447 = vmatpush1.bf16.msra.mxu0 %v1742_v30 }
 0xdba   :  { %1449 = vmatprep.subr.bf16.mxu0 %v1749_v32 }
 0xdbd   :  { %1451 = vmatpush1.bf16.msra.mxu0 %v1761_v35 }
 0xe83   :  { %v1005_v61 = vpop.f32.mrb[8].mxu0 }
 0xe84   :  { %v1010_v62 = vadd.f32 %v1005_v61, %v1826_v50  ;;  %v1007_v63 = vpop.f32.mrb[9].mxu0 }
 0xe85   :  { %v1011_v13 = vadd.f32 %v1007_v63, %v1828_v51 }
 0xe86   :  { %v1279_v1 = vmul.f32 -1.442695, %v1010_v62 }
 0xe87   :  { %v1280_v44 = vmul.f32 -1.442695, %v1011_v13 }
 0xe88   :  { %1555 = vpow2.f32 %v1279_v1 }
 0xe89   :  { %1557 = vpow2.f32 %v1280_v44 }
 0xe92   :  { %v1556_v17 = vpop.eup %1555 }
 0xe93   :  { %v1558_v23 = vpop.eup %1557  ;;  %v1018_v25 = vadd.f32 1.0, %v1556_v17 }
 0xe94   :  { %v1019_v2 = vadd.f32 1.0, %v1558_v23 }
 0xe96   :  { %1559 = vrcp.f32 %v1019_v2 }
 0xe97   :  { %1561 = vrcp.f32 %v1018_v25 }
 0xea0   :  { %v1560_v30 = vpop.eup %1559 }
 0xea1   :  { %v1024_v32 = vmul.f32 2.0, %v1560_v30  ;;  %v1562_v35 = vpop.eup %1561 }
 0xea2   :  { %v1026_v50 = vmul.f32 %v1562_v35, %v931_v49 }
 0xea3   :  { %v1281_v45 = vadd.f32 -1.0, %v1024_v32 }
 0xea5   :  { %v1027_v3 = vmul.f32 %v1562_v35, %v1281_v45 }
 0xea7   :  { %1029 = vrot.lane.b32.xlu1 %v1027_v3, %s1627_s0 }
 0xf19   :  { %v1030_v4 = vpop.permute.xlu1 %1029 }
 0xf1a   :  { %v1032_v51 = vadd.f32 %v1030_v4, %v1026_v50 }
 0xf1c   :  { %1563 = vtanh.f32 %v1032_v51 }
 0xf26   :  { %v1564_v5 = vpop.eup %1563 }
 0xf27   :  { %v1034_v6 = vmul.f32 %v1564_v5, %v1560_v30 }
 0xf29   :  { %1036 = vrot.lane.b32.xlu0 %v1034_v6, %s1627_s0 }
 0xf9b   :  { %v1037_v7 = vpop.permute.xlu0 %1036 }
 0xf9c   :  { %1282 = vmatmul.mubr.msk.f32.vlgmr.msra.gmra.mrb[10].mxu0 %vm222_vm3, %v1037_v7 }
0x106f   :  { %v1106_v8 = vpop.f32.mrb[10].mxu0 }
0x1070   :  { %v1111_v9 = vadd.f32 %v1106_v8, %v1830_v52  ;;  %v1108_v11 = vpop.f32.mrb[11].mxu0  ;;  %v1136_v52 = vld [vmem:[%s1956_s3] sm:$0xff] }
0x1071   :  { %v1112_v12 = vadd.f32 %v1108_v11, %v1832_v53  ;;  %v1137_v53 = vld [vmem:[%s1956_s3 + $0x8] sm:$0xff] }
0x1072   :  { %v1283_v14 = vmul.f32 -1.442695, %v1111_v9  ;;  %v1453_v28 = vpack.c.bf16 %v1137_v53, %v1136_v52 }
0x1073   :  { %v1284_v15 = vmul.f32 -1.442695, %v1112_v12 }
0x1074   :  { %1565 = vpow2.f32 %v1283_v14  ;;  %1454 = vmatpush3.bf16.msra.mxu1 %v1453_v28 }
0x1075   :  { %1567 = vpow2.f32 %v1284_v15  ;;  %1455 = vmatprep.subr.bf16.mxu1 %v1628_v27 }
0x1078   :  { %1457 = vmatpush3.bf16.msra.mxu1 %v1456_v31 }
0x107e   :  { %v1566_v16 = vpop.eup %1565 }
0x107f   :  { %v1568_v18 = vpop.eup %1567  ;;  %v1119_v20 = vadd.f32 1.0, %v1566_v16 }
0x1080   :  { %v1120_v19 = vadd.f32 1.0, %v1568_v18 }
0x1082   :  { %1569 = vrcp.f32 %v1120_v19 }
0x1083   :  { %1571 = vrcp.f32 %v1119_v20 }
0x108c   :  { %v1570_v21 = vpop.eup %1569 }
0x108d   :  { %v1125_v22 = vmul.f32 2.0, %v1570_v21  ;;  %v1572_v46 = vpop.eup %1571 }
0x108e   :  { %v1127_v42 = vmul.f32 %v1572_v46, %v1032_v51 }
0x108f   :  { %v1285_v24 = vadd.f32 -1.0, %v1125_v22 }
0x1091   :  { %v1128_v26 = vmul.f32 %v1572_v46, %v1285_v24 }
0x1093   :  { %1130 = vrot.lane.b32.xlu1 %v1128_v26, %s1627_s0 }
0x1105   :  { %v1131_v33 = vpop.permute.xlu1 %1130 }
0x1106   :  { %v1133_v43 = vadd.f32 %v1131_v33, %v1127_v42 }
0x1108   :  { %1573 = vtanh.f32 %v1133_v43 }
0x1112   :  { %v1574_v34 = vpop.eup %1573 }
0x1113   :  { %v1135_v36 = vmul.f32 %v1574_v34, %v1570_v21 }
0x1115   :  { %1141 = vrot.lane.b32.xlu0 %v1135_v36, %s1630_s5 }
0x1187   :  { %v1142_v37 = vpop.permute.xlu0 %1141 }
0x1188   :  { %1302 = vmatmul.mubr.msk.f32.vlgmr.msra.gmra.mrb[18].mxu1 %vm1143_vm5, %v1142_v37 }
0x125b   :  { %v1212_v0 = vpop.f32.mrb[18].mxu1 }
0x125c   :  { %v1221_v39 = vadd.f32 %v1287_v38, %v1212_v0  ;;  %v1303_v40 = vpop.f32.mrb[19].mxu1 }
0x125e   :  { %1223 = vst.msk [vmem:[#allocation5] sm:$0x3] %vm1222_vm6, %v1221_v39 }
0x125f   :  { %1608 = shalt.err (!%p1605_p12)
}
0x1260   :  { %s1609_s13 = scalar_lea.hbm %s1957_s4, 32 }
0x1261   :  { %p1610_p13 = scmp.ne.s32.totalorder %s1957_s4, %s1609_s13  ;;  %p1613_p0 = scmp.lt.u32.totalorder %s1609_s13, %s1957_s4 }
0x1263   :  { %p1615_p1 = pnand %p1613_p0, %p1610_p13 }
0x1265   :  { %1618 = shalt.err (!%p1615_p1)
}
0x1266   :  { %1233 = dma.vmem_to_hbm [thread:$0]  %s1231_s9, 32, %s1957_s4, [#allocation4]  }
0x1267   :  { %1621 = dma.done.wait [#allocation4], 32  }
0x1268   :  { %1622 = vsyncadd [#allocation4], 4294967264 }
0x1269   :  { %1237 = vsyncpa [#allocation3], 1 }
0x126a   :  { %1238 = vsyncpa [#allocation4], 1 }

</bundles_post_ra>
